<compile_context>
chip_gen: v6e
topology: v6e:2x2x1
jax: 0.10.0
libtpu: 0.0.40
codegen_flags: <defaults>
</compile_context>

<pallas_src>
import jax
import jax.numpy as jnp
from jax.experimental import pallas as pl
from jax.experimental.pallas import tpu as pltpu


# ---------------------------------------------------------------------------
# Call 1: feature projection + attention dot-products (one shot, tiny)
# ---------------------------------------------------------------------------
def project_kernel(x_ref, w_ref, ai_ref, ajT_ref, h_ref, si_ref, sjT_ref):
    # h = x @ W^T (W already transposed and zero-padded to Fp lanes)
    h = jnp.dot(x_ref[...], w_ref[...], preferred_element_type=jnp.float32)  # [N, Fp]
    h_ref[...] = h
    # target-node part of the attention logit:  si[i] = a_i . h[i]
    si_ref[...] = jnp.dot(h, ai_ref[...], preferred_element_type=jnp.float32)  # [N, 1]
    # source-node part, already transposed:     sjT[0, j] = a_j . h[j]
    sjT_ref[...] = jax.lax.dot_general(
        ajT_ref[...], h,
        dimension_numbers=(((1,), (1,)), ((), ())),
        preferred_element_type=jnp.float32)                                    # [1, N]


# ---------------------------------------------------------------------------
# Call 2: per destination-row tile: masked softmax + weighted aggregation
# ---------------------------------------------------------------------------
def gat_agg_kernel(adj_ref, h_ref, si_ref, sjT_ref, out_ref):
    adj = adj_ref[...]                                   # [TM, N]; NaN = no edge
    edge = jnp.logical_not(jnp.isnan(adj))               # edge mask (derived)
    w = jnp.where(edge, adj, 0.0)                        # finite edge weights

    # attention logits: s[i, j] = leaky_relu(a_i.h[i] + a_j.h[j], 0.2) * w[i, j]
    s = si_ref[...] + sjT_ref[...]                       # [TM, N] broadcast add
    s = jnp.where(s > 0, s, 0.2 * s)                     # leaky_relu(0.2)
    s = jnp.where(edge, s * w, jnp.float32(-1e30))       # single mask select

    # masked softmax over sources j (row-wise)
    m = jnp.max(s, axis=1, keepdims=True)                # [TM, 1]
    m = jnp.where(m > -1e29, m, 0.0)                     # rows with no edges
    p = jnp.exp(s - m)                                   # non-edges underflow to 0
    denom = jnp.sum(p, axis=1, keepdims=True)
    inv = jnp.where(denom > 0.0, pl.reciprocal(denom, approx=True), 0.0)
    alpha = p * inv                                      # [TM, N]

    # aggregate + final ReLU (lane-dense [TM, Fp] store, Fp = 128-multiple)
    out = jnp.dot(alpha, h_ref[...], preferred_element_type=jnp.float32)
    out_ref[...] = jnp.maximum(out, 0.0)


# ---------------------------------------------------------------------------
# Wrapper
# ---------------------------------------------------------------------------
def gat_net_pallas(x, w_lin, a_att, src, dst, edge_weight, *, tm=None):
    """x: [N, Fin]; w_lin: [Fout, Fin] (torch Linear layout); a_att: [1, 2*Fout]."""
    N, Fin = x.shape
    Fout = w_lin.shape[0]
    Fp = ((Fout + 127) // 128) * 128                     # lane-dense padded width

    # --- glue: pad parameters, densify graph with NaN sentinel ---
    wlin_t = jnp.zeros((Fin, Fp), jnp.float32).at[:, :Fout].set(
        w_lin.T.astype(jnp.float32))
    a_i = jnp.zeros((Fp, 1), jnp.float32).at[:Fout, 0].set(
        a_att[0, :Fout].astype(jnp.float32))
    a_jT = jnp.zeros((1, Fp), jnp.float32).at[0, :Fout].set(
        a_att[0, Fout:].astype(jnp.float32))
    # NaN marks "no edge": mask is derived in-kernel, so only ONE N x N stream,
    # and zero-weight edges remain valid edges.
    adj = jnp.full((N, N), jnp.nan, jnp.float32).at[dst, src].set(
        edge_weight.astype(jnp.float32))

    full = lambda shape: pl.BlockSpec(shape, lambda i: (0,) * len(shape))

    # --- call 1: projection (one shot) ---
    h, si, sjT = pl.pallas_call(
        project_kernel,
        out_shape=(jax.ShapeDtypeStruct((N, Fp), jnp.float32),
                   jax.ShapeDtypeStruct((N, 1), jnp.float32),
                   jax.ShapeDtypeStruct((1, N), jnp.float32)),
        grid=(1,),
        in_specs=[full((N, Fin)), full((Fin, Fp)), full((Fp, 1)), full((1, Fp))],
        out_specs=(full((N, Fp)), full((N, 1)), full((1, N))),
        compiler_params=pltpu.CompilerParams(dimension_semantics=("arbitrary",)),
    )(x.astype(jnp.float32), wlin_t, a_i, a_jT)

    # --- call 2: row-tiled masked softmax + aggregation ---
    if tm is None:
        tm = min(N, 256)                # sweep per generation; smaller on v7x
    tm = min(tm, N)
    assert N % tm == 0 and (tm % 8 == 0 or tm == N), \
        "TM must tile N in 8-row (sublane) groups"

    out_pad = pl.pallas_call(
        gat_agg_kernel,
        out_shape=jax.ShapeDtypeStruct((N, Fp), jnp.float32),
        grid=(N // tm,),
        in_specs=[
            pl.BlockSpec((tm, N), lambda i: (i, 0)),    # adjacency row tile
            pl.BlockSpec((N, Fp), lambda i: (0, 0)),    # h, resident (DMA once)
            pl.BlockSpec((tm, 1), lambda i: (i, 0)),    # si row tile
            pl.BlockSpec((1, N), lambda i: (0, 0)),     # sjT, resident
        ],
        out_specs=pl.BlockSpec((tm, Fp), lambda i: (i, 0)),
        compiler_params=pltpu.CompilerParams(
            dimension_semantics=("parallel",)),          # rows independent -> 2 TCs on v7x
    )(adj, h, si, sjT)

    return out_pad[:, :Fout]


# ---------------------------------------------------------------------------
# Pure-JAX reference with edge-list (PyG-style) semantics
# ---------------------------------------------------------------------------
def gat_net_ref(x, w_lin, a_att, src, dst, edge_weight):
    N = x.shape[0]
    h = x @ w_lin.T
    xi, xj = h[dst], h[src]
    al = jnp.concatenate([xi, xj], axis=-1) @ a_att[0]
    al = jnp.where(al > 0, al, 0.2 * al)
    al = al * edge_weight
    m = jax.ops.segment_max(al, dst, num_segments=N)
    m = jnp.where(jnp.isfinite(m), m, 0.0)
    p = jnp.exp(al - m[dst])
    den = jax.ops.segment_sum(p, dst, num_segments=N)
    alpha = p / den[dst]
    out = jax.ops.segment_sum(xj * alpha[:, None], dst, num_segments=N)
    return jnp.maximum(out, 0.0)


if __name__ == "__main__":
    N, Fin, Fout = 16, 8, 32

    key = jax.random.PRNGKey(0)
    k_x, k_w, k_a, k_e = jax.random.split(key, 4)

    x = jax.random.normal(k_x, (N, Fin), jnp.float32)

    # deterministic xavier-uniform init (matches torch Linear weight shapes)
    b_lin = (6.0 / (Fin + Fout)) ** 0.5
    w_lin = jax.random.uniform(k_w, (Fout, Fin), jnp.float32, -b_lin, b_lin)
    b_att = (6.0 / (1 + 2 * Fout)) ** 0.5
    a_att = jax.random.uniform(k_a, (1, 2 * Fout), jnp.float32, -b_att, b_att)

    # small deterministic graph: ring + skip-3 edges (every node has in-edges)
    # NOTE: duplicate (src, dst) pairs would collapse under the dense scatter
    # (last-write-wins) unlike PyG edge-list semantics; none exist here.
    src = jnp.array([j for j in range(N)] + [j for j in range(N)], jnp.int32)
    dst = jnp.array([(j + 1) % N for j in range(N)] + [(j + 3) % N for j in range(N)],
                    jnp.int32)
    edge_weight = jax.random.uniform(k_e, (src.shape[0],), jnp.float32, 0.5, 1.5)

    # tm=8 -> grid=(2,) row tiles even at this toy size (exercises the pipeline)
    out = gat_net_pallas(x, w_lin, a_att, src, dst, edge_weight, tm=8)
    out = jax.block_until_ready(out)

    ref = gat_net_ref(x, w_lin, a_att, src, dst, edge_weight)
    assert out.shape == (N, Fout)
    # tolerance accounts for the EUP approximate reciprocal in the softmax
    assert jnp.allclose(out, ref, atol=2e-3, rtol=2e-3), "mismatch vs reference"

    print("KERNEL_OK")
</pallas_src>

<mosaic_0001>
module attributes {stable_mosaic.version = 11 : i64} {
  func.func @project_kernel(%arg0: i32, %arg1: memref<16x8xf32, #tpu.memory_space<vmem>>, %arg2: memref<8x128xf32, #tpu.memory_space<vmem>>, %arg3: memref<128x1xf32, #tpu.memory_space<vmem>>, %arg4: memref<1x128xf32, #tpu.memory_space<vmem>>, %arg5: memref<16x128xf32, #tpu.memory_space<vmem>>, %arg6: memref<16x1xf32, #tpu.memory_space<vmem>>, %arg7: memref<1x16xf32, #tpu.memory_space<vmem>>) attributes {dimension_semantics = [#tpu.dimension_semantics<arbitrary>], iteration_bounds = array<i64: 1>, scalar_prefetch = 0 : i64, scratch_operands = 0 : i64, tpu.core_type = #tpu.core_type<tc>, window_params = [{pipeline_mode = #tpu.pipeline_mode<synchronous>, transform_indices = @transform_0, window_bounds = array<i64: 16, 8>}, {pipeline_mode = #tpu.pipeline_mode<synchronous>, transform_indices = @transform_1, window_bounds = array<i64: 8, 128>}, {pipeline_mode = #tpu.pipeline_mode<synchronous>, transform_indices = @transform_2, window_bounds = array<i64: 128, 1>}, {pipeline_mode = #tpu.pipeline_mode<synchronous>, transform_indices = @transform_3, window_bounds = array<i64: 1, 128>}, {pipeline_mode = #tpu.pipeline_mode<synchronous>, transform_indices = @transform_4, window_bounds = array<i64: 16, 128>}, {pipeline_mode = #tpu.pipeline_mode<synchronous>, transform_indices = @transform_5, window_bounds = array<i64: 16, 1>}, {pipeline_mode = #tpu.pipeline_mode<synchronous>, transform_indices = @transform_6, window_bounds = array<i64: 1, 16>}]} {
    %c0 = arith.constant 0 : index
    %c0_0 = arith.constant 0 : index
    %0 = vector.load %arg1[%c0, %c0_0] : memref<16x8xf32, #tpu.memory_space<vmem>>, vector<16x8xf32>
    %c0_1 = arith.constant 0 : index
    %c0_2 = arith.constant 0 : index
    %1 = vector.load %arg2[%c0_1, %c0_2] : memref<8x128xf32, #tpu.memory_space<vmem>>, vector<8x128xf32>
    %cst = arith.constant dense<0.000000e+00> : vector<16x128xf32>
    %2 = tpu.matmul %0, %1, %cst {dimension_numbers = #tpu.dot_dimension_numbers<[1], [0], [0], [1], [0, 0, 1, 1], [], []>} : vector<16x8xf32>, vector<8x128xf32>, vector<16x128xf32> -> vector<16x128xf32>
    %c0_3 = arith.constant 0 : index
    %c0_4 = arith.constant 0 : index
    %3 = vector.load %arg5[%c0_3, %c0_4] : memref<16x128xf32, #tpu.memory_space<vmem>>, vector<16x128xf32>
    tpu.vector_store %arg5[%c0_3, %c0_4], %2 {strides = array<i32>} : memref<16x128xf32, #tpu.memory_space<vmem>>, vector<16x128xf32>,
    %c0_5 = arith.constant 0 : index
    %c0_6 = arith.constant 0 : index
    %4 = vector.load %arg3[%c0_5, %c0_6] : memref<128x1xf32, #tpu.memory_space<vmem>>, vector<128x1xf32>
    %cst_7 = arith.constant dense<0.000000e+00> : vector<16x1xf32>
    %5 = tpu.matmul %2, %4, %cst_7 {dimension_numbers = #tpu.dot_dimension_numbers<[1], [0], [0], [1], [0, 0, 1, 1], [], []>} : vector<16x128xf32>, vector<128x1xf32>, vector<16x1xf32> -> vector<16x1xf32>
    %c0_8 = arith.constant 0 : index
    %c0_9 = arith.constant 0 : index
    %6 = vector.load %arg6[%c0_8, %c0_9] : memref<16x1xf32, #tpu.memory_space<vmem>>, vector<16x1xf32>
    tpu.vector_store %arg6[%c0_8, %c0_9], %5 {strides = array<i32>} : memref<16x1xf32, #tpu.memory_space<vmem>>, vector<16x1xf32>,
    %c0_10 = arith.constant 0 : index
    %c0_11 = arith.constant 0 : index
    %7 = vector.load %arg4[%c0_10, %c0_11] : memref<1x128xf32, #tpu.memory_space<vmem>>, vector<1x128xf32>
    %cst_12 = arith.constant dense<0.000000e+00> : vector<1x16xf32>
    %8 = tpu.matmul %7, %2, %cst_12 {dimension_numbers = #tpu.dot_dimension_numbers<[1], [1], [0], [0], [0, 0, 1, 0], [], []>} : vector<1x128xf32>, vector<16x128xf32>, vector<1x16xf32> -> vector<1x16xf32>
    %c0_13 = arith.constant 0 : index
    %c0_14 = arith.constant 0 : index
    %9 = vector.load %arg7[%c0_13, %c0_14] : memref<1x16xf32, #tpu.memory_space<vmem>>, vector<1x16xf32>
    tpu.vector_store %arg7[%c0_13, %c0_14], %8 {strides = array<i32>} : memref<1x16xf32, #tpu.memory_space<vmem>>, vector<1x16xf32>,
    return
  }
  func.func @transform_0(%arg0: i32) -> (i32, i32) {
    %c0_i32 = arith.constant 0 : i32
    %c0_i32_0 = arith.constant 0 : i32
    %c0_i32_1 = arith.constant 0 : i32
    return %c0_i32, %c0_i32_0 : i32, i32
  }
  func.func @transform_1(%arg0: i32) -> (i32, i32) {
    %c0_i32 = arith.constant 0 : i32
    %c0_i32_0 = arith.constant 0 : i32
    %c0_i32_1 = arith.constant 0 : i32
    return %c0_i32, %c0_i32_0 : i32, i32
  }
  func.func @transform_2(%arg0: i32) -> (i32, i32) {
    %c0_i32 = arith.constant 0 : i32
    %c0_i32_0 = arith.constant 0 : i32
    %c0_i32_1 = arith.constant 0 : i32
    return %c0_i32, %c0_i32_0 : i32, i32
  }
  func.func @transform_3(%arg0: i32) -> (i32, i32) {
    %c0_i32 = arith.constant 0 : i32
    %c0_i32_0 = arith.constant 0 : i32
    %c0_i32_1 = arith.constant 0 : i32
    return %c0_i32, %c0_i32_0 : i32, i32
  }
  func.func @transform_4(%arg0: i32) -> (i32, i32) {
    %c0_i32 = arith.constant 0 : i32
    %c0_i32_0 = arith.constant 0 : i32
    %c0_i32_1 = arith.constant 0 : i32
    return %c0_i32, %c0_i32_0 : i32, i32
  }
  func.func @transform_5(%arg0: i32) -> (i32, i32) {
    %c0_i32 = arith.constant 0 : i32
    %c0_i32_0 = arith.constant 0 : i32
    %c0_i32_1 = arith.constant 0 : i32
    return %c0_i32, %c0_i32_0 : i32, i32
  }
  func.func @transform_6(%arg0: i32) -> (i32, i32) {
    %c0_i32 = arith.constant 0 : i32
    %c0_i32_0 = arith.constant 0 : i32
    %c0_i32_1 = arith.constant 0 : i32
    return %c0_i32, %c0_i32_0 : i32, i32
  }
}

</mosaic_0001>

<bundles_post_ra>
// kernel: tpu_custom_call.1
= control target key start
LH: loop header
LB: loop body
LE: loop exit
PB: predicated region body
PF: predicated region fallthrough
CT: control target
= control target key end

     0   :  { %12 = vsyncpa [#allocation3], 0  ;;  %vm25_vm0 = vcmask 64512   ;;  %s546_s0 = inlined_call_operand.vmem [shape: f32[16,8], index: 0, kind: input, shape index: {}]   ;;  %s547_s1 = inlined_call_operand.vmem [shape: f32[8,128], index: 1, kind: input, shape index: {}]   ;;  %s548_s2 = inlined_call_operand.vmem [shape: f32[128,1], index: 2, kind: input, shape index: {}]   ;;  %s549_s3 = inlined_call_operand.vmem [shape: f32[1,128], index: 3, kind: input, shape index: {}]   ;;  %s550_s4 = inlined_call_operand.hbm [shape: f32[16,128], index: 4, kind: output, shape index: {0}]   ;;  %s551_s5 = inlined_call_operand.vmem [shape: f32[16,1], index: 5, kind: output, shape index: {1}]   ;;  %s552_s6 = inlined_call_operand.hbm [shape: f32[1,16], index: 6, kind: output, shape index: {2}]  }
   0x1   :  { %v24_v0 = vld [vmem:[%s547_s1] sm:$0xff]  ;;  %v23_v2 = vld [vmem:[%s546_s0 + $0x8] sm:$0xff]  ;;  %v124_v3 = vld [vmem:[%s548_s2 + $0x78] sm:$0xff] }
   0x2   :  { %v22_v1 = vld [vmem:[%s546_s0] sm:$0xff]  ;;  %336 = vmatprep.subr.mxu0 %v24_v0  ;;  %v123_v4 = vld [vmem:[%s548_s2 + $0x70] sm:$0xff]  ;;  %341 = vmatprep.subr.mxu1 %v124_v3  ;;  %v122_v5 = vld [vmem:[%s548_s2 + $0x68] sm:$0xff] }
   0x3   :  { %338 = vmatprep.mubr.msk.f32.mxu0 %vm25_vm0, %v22_v1  ;;  %337 = vmatpush3.msra.mxu0 %v24_v0  ;;  %v121_v6 = vld [vmem:[%s548_s2 + $0x60] sm:$0xff] }
   0x4   :  { %339 = vmatmul.mubr.msk.f32.vlgmr.msra.gmra.mxu0 %vm25_vm0, %v23_v2  ;;  %342 = vmatpush3.msra.mxu1 %v124_v3 }
   0x5   :  { %343 = vmatprep.subr.mxu1 %v123_v4 }
   0x6   :  { %344 = vmatpush3.msra.mxu1 %v123_v4 }
   0x7   :  { %13 = vsyncpa [#allocation5], 0  ;;  %345 = vmatprep.subr.mxu1 %v122_v5  ;;  %v120_v7 = vld [vmem:[%s548_s2 + $0x58] sm:$0xff]  ;;  %v119_v8 = vld [vmem:[%s548_s2 + $0x50] sm:$0xff]  ;;  %v433_v18 = vmov 0.0   ;;  %vm434_vm1 = vmmov 0  }
   0x8   :  { %346 = vmatpush3.msra.mxu1 %v122_v5  ;;  %v118_v9 = vld [vmem:[%s548_s2 + $0x48] sm:$0xff]  ;;  %v117_v10 = vld [vmem:[%s548_s2 + $0x40] sm:$0xff]  ;;  %v116_v11 = vld [vmem:[%s548_s2 + $0x38] sm:$0xff]  ;;  %376 = vmatprep.subr.mxu0 %v433_v18  ;;  %s435_s9 = smov [#allocation2]  }
   0x9   :  { %347 = vmatprep.subr.mxu1 %v121_v6  ;;  %v115_v12 = vld [vmem:[%s548_s2 + $0x30] sm:$0xff]  ;;  %v114_v13 = vld [vmem:[%s548_s2 + $0x28] sm:$0xff]  ;;  %v113_v14 = vld [vmem:[%s548_s2 + $0x20] sm:$0xff]  ;;  %380 = vmatprep.mubr.msk.f32.mxu0 %vm434_vm1, %v433_v18 }
   0xa   :  { %348 = vmatpush3.msra.mxu1 %v121_v6  ;;  %v112_v15 = vld [vmem:[%s548_s2 + $0x18] sm:$0xff]  ;;  %v111_v16 = vld [vmem:[%s548_s2 + $0x10] sm:$0xff]  ;;  %v110_v17 = vld [vmem:[%s548_s2 + $0x8] sm:$0xff] }
   0xb   :  { %349 = vmatprep.subr.mxu1 %v120_v7  ;;  %v109_v19 = vld [vmem:[%s548_s2] sm:$0xff]  ;;  %s281_s2 = sshll.u32 %s435_s9, 4  ;;  %s282_s2 = int_to_ptr.vmem [resolvable:$true] %s281_s2 }
   0xc   :  { %350 = vmatpush3.msra.mxu1 %v120_v7  ;;  %v203_v22 = vld [vmem:[%s549_s3] sm:$0x1]  ;;  %s389_s10 = scalar_lea.vmem %s282_s2, 256  ;;  %p394_p1 = scmp.lt.s32.totalorder %s282_s2, %s282_s2 }
   0xd   :  { %351 = vmatprep.subr.mxu1 %v119_v8  ;;  %p390_p0 = scmp.ne.s32.totalorder %s282_s2, %s389_s10  ;;  %p395_p2 = scmp.lt.s32.totalorder %s389_s10, %s389_s10 }
   0xe   :  { %352 = vmatpush3.msra.mxu1 %v119_v8 }
   0xf   :  { %353 = vmatprep.subr.mxu1 %v118_v9  ;;  %p396_p3 = por %p395_p2, %p394_p1 }
  0x10   :  { %354 = vmatpush3.msra.mxu1 %v118_v9 }
  0x11   :  { %355 = vmatprep.subr.mxu1 %v117_v10  ;;  %p397_p4 = pnand %p396_p3, %p390_p0 }
  0x12   :  { %356 = vmatpush3.msra.mxu1 %v117_v10 }
  0x13   :  { %357 = vmatprep.subr.mxu1 %v116_v11 }
  0x14   :  { %358 = vmatpush3.msra.mxu1 %v116_v11 }
  0x15   :  { %359 = vmatprep.subr.mxu1 %v115_v12 }
  0x16   :  { %360 = vmatpush3.msra.mxu1 %v115_v12 }
  0x17   :  { %361 = vmatprep.subr.mxu1 %v114_v13 }
  0x18   :  { %362 = vmatpush3.msra.mxu1 %v114_v13 }
  0x19   :  { %363 = vmatprep.subr.mxu1 %v113_v14 }
  0x1a   :  { %364 = vmatpush3.msra.mxu1 %v113_v14 }
  0x1b   :  { %365 = vmatprep.subr.mxu1 %v112_v15 }
  0x1c   :  { %366 = vmatpush3.msra.mxu1 %v112_v15 }
  0x1d   :  { %367 = vmatprep.subr.mxu1 %v111_v16 }
  0x1e   :  { %368 = vmatpush3.msra.mxu1 %v111_v16 }
  0x1f   :  { %369 = vmatprep.subr.mxu1 %v110_v17 }
  0x20   :  { %370 = vmatpush3.msra.mxu1 %v110_v17 }
  0x21   :  { %371 = vmatprep.subr.mxu1 %v109_v19 }
  0x22   :  { %372 = vmatpush3.msra.mxu1 %v109_v19 }
  0xc4   :  { %v340_v20 = vpop.f32.mrf.mxu0 }
  0xc5   :  { %108 = vst [vmem:[#allocation2 + $0x8] sm:$0xff] %v340_v20  ;;  %377 = vmatpush3.xpose.msra.mxu0 %v340_v20 }
  0xc6   :  { %v98_v21 = vpop.f32.mrf.mxu0  ;;  %378 = vmatprep.subr.mxu0 %v433_v18 }
  0xc7   :  { %107 = vst [vmem:[#allocation2] sm:$0xff] %v98_v21  ;;  %373 = vmatprep.mubr.f32.mxu1 %v98_v21 }
  0xc8   :  { %374 = vmatmul.mubr.f32.vlgmr.msra.gmra.mxu1 %v340_v20 }
  0xc9   :  { %379 = vmatpush3.xpose.msra.mxu0 %v98_v21 }
  0xcc   :  { %381 = vmatmul.mubr.f32.vlgmr.msra.gmra.mxu0 %v203_v22 }
  0xcd   :  { %400 = shalt.err (!%p397_p4)
}
  0xce   :  { %s436_s11 = smov 128   ;;  %s437_s12 = smov 8   ;;  %vm200_vm2 = vcmask 7168   ;;  %vm274_vm3 = vcmask 122880  }
  0xcf   :  { %287 = dma.vmem_to_hbm [thread:$0]  %s282_s2, 256, %s550_s4, [#allocation3], %s436_s11, %s436_s11, %s437_s12  }
  0xd0   :  { %s438_s3 = smov [#allocation4]  }
  0xd1   :  { %s296_s15 = sshll.u32 %s438_s3, 4  ;;  %s297_s15 = int_to_ptr.vmem [resolvable:$true] %s296_s15 }
  0xd2   :  { %s409_s20 = scalar_lea.vmem %s297_s15, 16  ;;  %s413_s4 = scalar_lea.vmem %s297_s15, 32 }
  0xd3   :  { %p410_p5 = scmp.ne.s32.totalorder %s297_s15, %s409_s20  ;;  %p414_p6 = scmp.lt.s32.totalorder %s297_s15, %s297_s15 }
  0xd4   :  { %p415_p7 = scmp.lt.s32.totalorder %s413_s4, %s409_s20 }
  0xd6   :  { %p416_p8 = por %p415_p7, %p414_p6 }
  0xd8   :  { %p417_p9 = pnand %p416_p8, %p410_p5 }
 0x188   :  { %v375_v23 = vpop.f32.mrf.mxu1 }
 0x189   :  { %202 = vst.msk [vmem:[%s551_s5 + $0x8] sm:$0xff] %vm200_vm2, %v375_v23 }
 0x18a   :  { %v191_v24 = vpop.f32.mrf.mxu1 }
 0x18b   :  { %201 = vst.msk [vmem:[%s551_s5] sm:$0xff] %vm200_vm2, %v191_v24 }
 0x18c   :  { %v270_v25 = vpop.f32.mrf.mxu0 }
 0x18d   :  { %275 = vst.msk [vmem:[#allocation4] sm:$0x1] %vm274_vm3, %v270_v25 }
 0x18e   :  { %v382_v26 = vpop.f32.mrf.mxu0 }
 0x18f   :  { %420 = shalt.err (!%p417_p9)
}
 0x190   :  { %299 = dma.vmem_to_hbm [thread:$0]  %s297_s15, 16, %s552_s6, [#allocation5]  }
 0x191   :  { %429 = dma.done.wait [#allocation3], 256  }
 0x192   :  { %430 = vsyncadd [#allocation3], 4294967040 }
 0x193   :  { %431 = dma.done.wait [#allocation5], 16  }
 0x194   :  { %432 = vsyncadd [#allocation5], 4294967280 }
 0x195   :  { %308 = vsyncpa [#allocation3], 1 }
 0x196   :  { %309 = vsyncpa [#allocation5], 1 }

</bundles_post_ra>
